<compile_context>
chip_gen: v7x
topology: tpu7x:2x2x1
jax: 0.10.0
libtpu: 0.0.40
codegen_flags: <defaults>
</compile_context>

<pallas_src>
import jax
import jax.numpy as jnp
from jax.experimental import pallas as pl
from jax.experimental.pallas import tpu as pltpu


def _round_up(x, m):
    return (x + m - 1) // m * m


def _make_policy_kernel(h_p, a_p, apply_affine):
    """Kernel specialized on padded hidden/action lane widths and the affine flag."""

    def kernel(x_ref, w1_ref, w2_ref, w3_ref, bp_ref, o_ref):
        x = x_ref[...]                                   # [TB, IN]  bf16
        b1 = bp_ref[0:1, 0:h_p]                          # f32, lane-aligned static slices
        b2 = bp_ref[1:2, 0:h_p]
        b3 = bp_ref[2:3, 0:a_p]
        # bf16 MXU operands, f32 accumulation; bias/ReLU/tanh stay f32 (VPU/EUP).
        h1 = jnp.maximum(
            jnp.dot(x, w1_ref[...], preferred_element_type=jnp.float32) + b1, 0.0)
        h2 = jnp.maximum(
            jnp.dot(h1.astype(jnp.bfloat16), w2_ref[...],
                    preferred_element_type=jnp.float32) + b2, 0.0)
        m = jnp.tanh(
            jnp.dot(h2.astype(jnp.bfloat16), w3_ref[...],
                    preferred_element_type=jnp.float32) + b3)
        if apply_affine:                                 # compiled out when action_space is None
            m = m * bp_ref[3:4, 0:a_p] + bp_ref[4:5, 0:a_p]
        o_ref[...] = m.astype(o_ref.dtype)

    return kernel


def pack_params(params, action_scale=None, action_bias=None):
    """Cast weights to bf16, zero-pad lane dims to 128, pack 1-D params into one slab."""
    w1, b1, w2, b2, w3, b3 = params
    num_inputs, hidden = w1.shape
    num_actions = w3.shape[1]
    h_p = _round_up(hidden, 128)
    a_p = _round_up(num_actions, 128)
    bp = max(h_p, a_p)

    def pad2(w, r, c):
        return jnp.pad(w, ((0, r - w.shape[0]), (0, c - w.shape[1]))).astype(jnp.bfloat16)

    # Layer-1 contraction dim stays un-padded (= num_inputs); lane dims pad to 128.
    w1p = pad2(w1, num_inputs, h_p)
    w2p = pad2(w2, h_p, h_p)
    w3p = pad2(w3, h_p, a_p)

    # rows: 0=b1, 1=b2, 2=b3, 3=action_scale, 4=action_bias, 5..7 pad  (all f32)
    bias_pack = jnp.zeros((8, bp), jnp.float32)
    bias_pack = bias_pack.at[0, :hidden].set(b1)
    bias_pack = bias_pack.at[1, :hidden].set(b2)
    bias_pack = bias_pack.at[2, :num_actions].set(b3)
    apply_affine = (action_scale is not None) or (action_bias is not None)
    if apply_affine:
        scale = (jnp.ones((num_actions,), jnp.float32) if action_scale is None
                 else jnp.asarray(action_scale, jnp.float32).reshape(-1))
        bias = (jnp.zeros((num_actions,), jnp.float32) if action_bias is None
                else jnp.asarray(action_bias, jnp.float32).reshape(-1))
        bias_pack = bias_pack.at[3, :num_actions].set(scale)
        bias_pack = bias_pack.at[4, :num_actions].set(bias)

    return dict(w1=w1p, w2=w2p, w3=w3p, bias_pack=bias_pack,
                num_inputs=num_inputs, hidden=hidden, num_actions=num_actions,
                apply_affine=apply_affine)


def _pick_batch_tile(B):
    """Sublane-aligned tile for small B; for large B the biggest tile that still
    gives >= 2 grid steps (so both v7x TensorCores get work)."""
    if B < 128:
        return _round_up(max(B, 1), 8)
    for tb in (512, 256, 128):
        if B >= 2 * tb:
            return tb
    return 128


def _vmem_limit_bytes(est):
    try:
        cap = pltpu.get_tpu_info().vmem_capacity_bytes   # 128 MiB v5e/v6e, 64 MiB v7x
    except Exception:
        cap = 64 << 20
    return int(min(max(est + (4 << 20), 8 << 20), 0.7 * cap))


def deterministic_policy_forward(state, packed):
    """Pallas forward of DeterministicPolicy on a packed parameter set."""
    B, num_inputs = state.shape
    assert num_inputs == packed["num_inputs"]
    h_p = packed["w2"].shape[0]
    a_p = packed["w3"].shape[1]
    bp = packed["bias_pack"].shape[1]
    num_actions = packed["num_actions"]

    tb = _pick_batch_tile(B)
    b_p = _round_up(B, tb)
    x = state.astype(jnp.bfloat16)                       # bf16 streamed operand
    if b_p != B:
        x = jnp.pad(x, ((0, b_p - B), (0, 0)))           # pad batch rows only

    kernel = _make_policy_kernel(h_p, a_p, packed["apply_affine"])

    # VMEM estimate: bf16 weights counted once (Buffered(1)), bias slab once,
    # streamed state/out tiles double-buffered, f32 activations once.
    est = (2 * (num_inputs * h_p + h_p * h_p + h_p * a_p)
           + 4 * 8 * bp
           + 2 * (2 * tb * num_inputs)
           + 2 * (4 * tb * a_p)
           + 4 * tb * (2 * h_p + a_p))
    vmem_limit = _vmem_limit_bytes(est)

    resident = dict(pipeline_mode=pl.Buffered(1))        # constant index_map -> single buffer
    out = pl.pallas_call(
        kernel,
        out_shape=jax.ShapeDtypeStruct((b_p, a_p), jnp.float32),
        grid=(b_p // tb,),
        in_specs=[
            pl.BlockSpec((tb, num_inputs), lambda i: (i, 0)),          # state streams over batch
            pl.BlockSpec((num_inputs, h_p), lambda i: (0, 0), **resident),
            pl.BlockSpec((h_p, h_p), lambda i: (0, 0), **resident),
            pl.BlockSpec((h_p, a_p), lambda i: (0, 0), **resident),
            pl.BlockSpec((8, bp), lambda i: (0, 0), **resident),       # packed biases/scale/bias
        ],
        out_specs=pl.BlockSpec((tb, a_p), lambda i: (i, 0)),
        compiler_params=pltpu.CompilerParams(
            dimension_semantics=("parallel",),
            vmem_limit_bytes=vmem_limit,
        ),
    )(x, packed["w1"], packed["w2"], packed["w3"], packed["bias_pack"])

    # Slice off batch padding and lane padding (valid actions only).
    return out[:B, :num_actions]


# ------------------------- init + reference (unpadded, f32) -----------------
def xavier_uniform(key, fan_in, fan_out, gain=1.0):
    # Matches torch.nn.init.xavier_uniform_ (gain=1), laid out [in, out].
    limit = gain * jnp.sqrt(6.0 / (fan_in + fan_out))
    return jax.random.uniform(key, (fan_in, fan_out), jnp.float32, -limit, limit)


def init_params(key, num_inputs, num_actions, hidden_dim):
    k1, k2, k3 = jax.random.split(key, 3)
    w1 = xavier_uniform(k1, num_inputs, hidden_dim)
    b1 = jnp.zeros((hidden_dim,), jnp.float32)
    w2 = xavier_uniform(k2, hidden_dim, hidden_dim)
    b2 = jnp.zeros((hidden_dim,), jnp.float32)
    w3 = xavier_uniform(k3, hidden_dim, num_actions)
    b3 = jnp.zeros((num_actions,), jnp.float32)
    return (w1, b1, w2, b2, w3, b3)


def reference_forward(state, params, action_scale=1.0, action_bias=0.0):
    w1, b1, w2, b2, w3, b3 = params
    x = jnp.maximum(state @ w1 + b1, 0.0)
    x = jnp.maximum(x @ w2 + b2, 0.0)
    return jnp.tanh(x @ w3 + b3) * action_scale + action_bias


if __name__ == "__main__":
    B, num_inputs, num_actions, hidden_dim = 8, 16, 8, 32
    key = jax.random.PRNGKey(0)
    k_state, k_params = jax.random.split(key)

    state = jax.random.normal(k_state, (B, num_inputs), jnp.float32)
    params = init_params(k_params, num_inputs, num_actions, hidden_dim)

    # action_space is None in this synthetic setup -> scale=1, bias=0 and the
    # affine is compiled out of the kernel.
    packed = pack_params(params, action_scale=None, action_bias=None)

    out = deterministic_policy_forward(state, packed)
    out = jax.block_until_ready(out)

    ref = reference_forward(state, params)
    assert out.shape == (B, num_actions)
    # bf16 matmul operands (f32 accumulation) -> loose tolerance vs f32 reference.
    assert jnp.allclose(out, ref, atol=3e-2, rtol=3e-2)
    print("KERNEL_OK")
</pallas_src>

<mosaic_0001>
module attributes {stable_mosaic.version = 11 : i64} {
  func.func @kernel(%arg0: i32, %arg1: memref<8x16xbf16, #tpu.memory_space<vmem>>, %arg2: memref<16x128xbf16, #tpu.memory_space<vmem>>, %arg3: memref<128x128xbf16, #tpu.memory_space<vmem>>, %arg4: memref<128x128xbf16, #tpu.memory_space<vmem>>, %arg5: memref<8x128xf32, #tpu.memory_space<vmem>>, %arg6: memref<8x128xf32, #tpu.memory_space<vmem>>) attributes {dimension_semantics = [#tpu.dimension_semantics<parallel>], iteration_bounds = array<i64: 1>, scalar_prefetch = 0 : i64, scratch_operands = 0 : i64, tpu.core_type = #tpu.core_type<tc>, window_params = [{transform_indices = @transform_0, window_bounds = array<i64: 8, 16>}, {pipeline_mode = #tpu.pipeline_mode<synchronous>, transform_indices = @transform_1, window_bounds = array<i64: 16, 128>}, {pipeline_mode = #tpu.pipeline_mode<synchronous>, transform_indices = @transform_2, window_bounds = array<i64: 128, 128>}, {pipeline_mode = #tpu.pipeline_mode<synchronous>, transform_indices = @transform_3, window_bounds = array<i64: 128, 128>}, {pipeline_mode = #tpu.pipeline_mode<synchronous>, transform_indices = @transform_4, window_bounds = array<i64: 8, 128>}, {transform_indices = @transform_5, window_bounds = array<i64: 8, 128>}]} {
    %c0 = arith.constant 0 : index
    %c0_0 = arith.constant 0 : index
    %0 = vector.load %arg1[%c0, %c0_0] : memref<8x16xbf16, #tpu.memory_space<vmem>>, vector<8x16xbf16>
    %c0_1 = arith.constant 0 : index
    %c0_2 = arith.constant 0 : index
    %1 = vector.load %arg5[%c0_1, %c0_2] : memref<8x128xf32, #tpu.memory_space<vmem>>, vector<1x128xf32>
    %c1 = arith.constant 1 : index
    %c0_3 = arith.constant 0 : index
    %2 = vector.load %arg5[%c1, %c0_3] : memref<8x128xf32, #tpu.memory_space<vmem>>, vector<1x128xf32>
    %c2 = arith.constant 2 : index
    %c0_4 = arith.constant 0 : index
    %3 = vector.load %arg5[%c2, %c0_4] : memref<8x128xf32, #tpu.memory_space<vmem>>, vector<1x128xf32>
    %c0_5 = arith.constant 0 : index
    %c0_6 = arith.constant 0 : index
    %4 = vector.load %arg2[%c0_5, %c0_6] : memref<16x128xbf16, #tpu.memory_space<vmem>>, vector<16x128xbf16>
    %cst = arith.constant dense<0.000000e+00> : vector<8x128xf32>
    %5 = tpu.matmul %0, %4, %cst {dimension_numbers = #tpu.dot_dimension_numbers<[1], [0], [0], [1], [0, 0, 1, 1], [], []>} : vector<8x16xbf16>, vector<16x128xbf16>, vector<8x128xf32> -> vector<8x128xf32>
    %6 = vector.broadcast %1 : vector<1x128xf32> to vector<8x128xf32>
    %7 = arith.addf %5, %6 : vector<8x128xf32>
    %cst_7 = arith.constant 0.000000e+00 : f32
    %8 = vector.broadcast %cst_7 : f32 to vector<8x128xf32>
    %9 = arith.maximumf %7, %8 : vector<8x128xf32>
    %10 = arith.truncf %9 : vector<8x128xf32> to vector<8x128xbf16>
    %c0_8 = arith.constant 0 : index
    %c0_9 = arith.constant 0 : index
    %11 = vector.load %arg3[%c0_8, %c0_9] : memref<128x128xbf16, #tpu.memory_space<vmem>>, vector<128x128xbf16>
    %cst_10 = arith.constant dense<0.000000e+00> : vector<8x128xf32>
    %12 = tpu.matmul %10, %11, %cst_10 {dimension_numbers = #tpu.dot_dimension_numbers<[1], [0], [0], [1], [0, 0, 1, 1], [], []>} : vector<8x128xbf16>, vector<128x128xbf16>, vector<8x128xf32> -> vector<8x128xf32>
    %13 = vector.broadcast %2 : vector<1x128xf32> to vector<8x128xf32>
    %14 = arith.addf %12, %13 : vector<8x128xf32>
    %cst_11 = arith.constant 0.000000e+00 : f32
    %15 = vector.broadcast %cst_11 : f32 to vector<8x128xf32>
    %16 = arith.maximumf %14, %15 : vector<8x128xf32>
    %17 = arith.truncf %16 : vector<8x128xf32> to vector<8x128xbf16>
    %c0_12 = arith.constant 0 : index
    %c0_13 = arith.constant 0 : index
    %18 = vector.load %arg4[%c0_12, %c0_13] : memref<128x128xbf16, #tpu.memory_space<vmem>>, vector<128x128xbf16>
    %cst_14 = arith.constant dense<0.000000e+00> : vector<8x128xf32>
    %19 = tpu.matmul %17, %18, %cst_14 {dimension_numbers = #tpu.dot_dimension_numbers<[1], [0], [0], [1], [0, 0, 1, 1], [], []>} : vector<8x128xbf16>, vector<128x128xbf16>, vector<8x128xf32> -> vector<8x128xf32>
    %20 = vector.broadcast %3 : vector<1x128xf32> to vector<8x128xf32>
    %21 = arith.addf %19, %20 : vector<8x128xf32>
    %22 = math.tanh %21 : vector<8x128xf32>
    %c0_15 = arith.constant 0 : index
    %c0_16 = arith.constant 0 : index
    %23 = vector.load %arg6[%c0_15, %c0_16] : memref<8x128xf32, #tpu.memory_space<vmem>>, vector<8x128xf32>
    tpu.vector_store %arg6[%c0_15, %c0_16], %22 {strides = array<i32>} : memref<8x128xf32, #tpu.memory_space<vmem>>, vector<8x128xf32>,
    return
  }
  func.func @transform_0(%arg0: i32) -> (i32, i32) {
    %c0_i32 = arith.constant 0 : i32
    %c0_i32_0 = arith.constant 0 : i32
    return %arg0, %c0_i32 : i32, i32
  }
  func.func @transform_1(%arg0: i32) -> (i32, i32) {
    %c0_i32 = arith.constant 0 : i32
    %c0_i32_0 = arith.constant 0 : i32
    %c0_i32_1 = arith.constant 0 : i32
    return %c0_i32, %c0_i32_0 : i32, i32
  }
  func.func @transform_2(%arg0: i32) -> (i32, i32) {
    %c0_i32 = arith.constant 0 : i32
    %c0_i32_0 = arith.constant 0 : i32
    %c0_i32_1 = arith.constant 0 : i32
    return %c0_i32, %c0_i32_0 : i32, i32
  }
  func.func @transform_3(%arg0: i32) -> (i32, i32) {
    %c0_i32 = arith.constant 0 : i32
    %c0_i32_0 = arith.constant 0 : i32
    %c0_i32_1 = arith.constant 0 : i32
    return %c0_i32, %c0_i32_0 : i32, i32
  }
  func.func @transform_4(%arg0: i32) -> (i32, i32) {
    %c0_i32 = arith.constant 0 : i32
    %c0_i32_0 = arith.constant 0 : i32
    %c0_i32_1 = arith.constant 0 : i32
    return %c0_i32, %c0_i32_0 : i32, i32
  }
  func.func @transform_5(%arg0: i32) -> (i32, i32) {
    %c0_i32 = arith.constant 0 : i32
    %c0_i32_0 = arith.constant 0 : i32
    return %arg0, %c0_i32 : i32, i32
  }
}

</mosaic_0001>

<bundles_post_ra>
// kernel: tpu_custom_call.1
= control target key start
LH: loop header
LB: loop body
LE: loop exit
PB: predicated region body
PF: predicated region fallthrough
CT: control target
= control target key end

     0   :  { %10 = vsyncpa [#allocation3], 0  ;;  %s744_s0 = inlined_call_operand.hbm [shape: bf16[8,16], index: 0, kind: input, shape index: {}]   ;;  %s745_s1 = inlined_call_operand.hbm [shape: bf16[16,128], index: 1, kind: input, shape index: {}]   ;;  %s746_s2 = inlined_call_operand.hbm [shape: bf16[128,128], index: 2, kind: input, shape index: {}]   ;;  %s747_s3 = inlined_call_operand.hbm [shape: bf16[128,128], index: 3, kind: input, shape index: {}]   ;;  %s748_s4 = inlined_call_operand.vmem [shape: f32[8,128], index: 4, kind: input, shape index: {}]   ;;  %s749_s5 = inlined_call_operand.hbm [shape: f32[8,128], index: 5, kind: output, shape index: {}]  }
   0x1   :  { %11 = vsyncpa [#allocation6], 0 }
   0x2   :  { %12 = vsyncpa [#allocation9], 0 }
   0x3   :  { %13 = vsyncpa [#allocation4], 0  ;;  %s607_s18 = smov [#allocation5]   ;;  %s489_s22 = scalar_lea.hbm %s745_s1, 128 }
   0x4   :  { %s29_s19 = sshll.u32 %s607_s18, 4  ;;  %p490_p0 = scmp.ne.s32.totalorder %s745_s1, %s489_s22  ;;  %s30_s19 = int_to_ptr.vmem [resolvable:$true] %s29_s19 }
   0x5   :  { %p493_p1 = scmp.lt.u32.totalorder %s489_s22, %s745_s1 }
   0x7   :  { %p495_p2 = pnand %p493_p1, %p490_p0 }
   0x9   :  { %498 = shalt.err (!%p495_p2)
}
   0xa   :  { %s499_s27 = scalar_lea.vmem %s30_s19, 128  ;;  %p504_p4 = scmp.lt.s32.totalorder %s30_s19, %s30_s19 }
   0xb   :  { %p500_p3 = scmp.ne.s32.totalorder %s30_s19, %s499_s27  ;;  %p505_p5 = scmp.lt.s32.totalorder %s499_s27, %s499_s27 }
   0xd   :  { %p506_p6 = por %p505_p5, %p504_p4 }
   0xf   :  { %p507_p7 = pnand %p506_p6, %p500_p3 }
  0x11   :  { %510 = shalt.err (!%p507_p7)
}
  0x12   :  { %s608_s28 = smov 64   ;;  %s609_s29 = smov 4  }
  0x13   :  { %35 = dma.hbm_to_vmem [thread:$0]  %s745_s1, 128, %s30_s19, [#allocation6], %s608_s28, %s608_s28, %s609_s29  }
  0x14   :  { %s610_s7 = smov [#allocation2]   ;;  %s611_s9 = smov [#allocation7]  }
  0x15   :  { %s20_s8 = sshll.u32 %s610_s7, 4  ;;  %s41_s10 = sshll.u32 %s611_s9, 4  ;;  %s21_s8 = int_to_ptr.vmem [resolvable:$true] %s20_s8  ;;  %s42_s10 = int_to_ptr.vmem [resolvable:$true] %s41_s10 }
  0x16   :  { %s511_s13 = scalar_lea.hbm %s744_s0, 64 }
  0x17   :  { %p512_p8 = scmp.ne.s32.totalorder %s744_s0, %s511_s13  ;;  %p515_p9 = scmp.lt.u32.totalorder %s511_s13, %s744_s0 }
  0x19   :  { %p517_p10 = pnand %p515_p9, %p512_p8 }
  0x1b   :  { %520 = shalt.err (!%p517_p10)
}
  0x1c   :  { %s521_s1 = scalar_lea.vmem %s21_s8, 64  ;;  %p526_p12 = scmp.lt.s32.totalorder %s21_s8, %s21_s8 }
  0x1d   :  { %p522_p11 = scmp.ne.s32.totalorder %s21_s8, %s521_s1  ;;  %p527_p13 = scmp.lt.s32.totalorder %s521_s1, %s521_s1 }
  0x1f   :  { %p528_p0 = por %p527_p13, %p526_p12 }
  0x21   :  { %p529_p1 = pnand %p528_p0, %p522_p11 }
  0x23   :  { %532 = shalt.err (!%p529_p1)
}
  0x24   :  { %23 = dma.hbm_to_vmem [thread:$0]  %s744_s0, 64, %s21_s8, [#allocation3]  }
  0x25   :  { %s533_s22 = scalar_lea.hbm %s746_s2, 1024 }
  0x26   :  { %p534_p2 = scmp.ne.s32.totalorder %s746_s2, %s533_s22  ;;  %p537_p3 = scmp.lt.u32.totalorder %s533_s22, %s746_s2 }
  0x28   :  { %p539_p4 = pnand %p537_p3, %p534_p2 }
  0x2a   :  { %542 = shalt.err (!%p539_p4)
}
  0x2b   :  { %s543_s27 = scalar_lea.vmem %s42_s10, 1024  ;;  %p548_p6 = scmp.lt.s32.totalorder %s42_s10, %s42_s10 }
  0x2c   :  { %p544_p5 = scmp.ne.s32.totalorder %s42_s10, %s543_s27  ;;  %p549_p7 = scmp.lt.s32.totalorder %s543_s27, %s543_s27 }
  0x2e   :  { %p550_p8 = por %p549_p7, %p548_p6 }
  0x30   :  { %p551_p9 = pnand %p550_p8, %p544_p5 }
  0x32   :  { %554 = shalt.err (!%p551_p9)
}
  0x33   :  { %47 = dma.hbm_to_vmem [thread:$0]  %s746_s2, 1024, %s42_s10, [#allocation6], %s608_s28, %s608_s28, %s609_s29  }
  0x34   :  { %s612_s6 = smov [#allocation8]   ;;  %s555_s11 = scalar_lea.hbm %s747_s3, 1024 }
  0x35   :  { %s53_s7 = sshll.u32 %s612_s6, 4  ;;  %p556_p10 = scmp.ne.s32.totalorder %s747_s3, %s555_s11  ;;  %s54_s7 = int_to_ptr.vmem [resolvable:$true] %s53_s7 }
  0x36   :  { %p559_p11 = scmp.lt.u32.totalorder %s555_s11, %s747_s3 }
  0x38   :  { %p561_p12 = pnand %p559_p11, %p556_p10 }
  0x3a   :  { %564 = shalt.err (!%p561_p12)
}
  0x3b   :  { %s565_s16 = scalar_lea.vmem %s54_s7, 1024  ;;  %p570_p0 = scmp.lt.s32.totalorder %s54_s7, %s54_s7 }
  0x3c   :  { %p566_p13 = scmp.ne.s32.totalorder %s54_s7, %s565_s16  ;;  %p571_p1 = scmp.lt.s32.totalorder %s565_s16, %s565_s16 }
  0x3e   :  { %p572_p2 = por %p571_p1, %p570_p0 }
  0x40   :  { %p573_p3 = pnand %p572_p2, %p566_p13 }
  0x42   :  { %576 = shalt.err (!%p573_p3)
}
  0x43   :  { %59 = dma.hbm_to_vmem [thread:$0]  %s747_s3, 1024, %s54_s7, [#allocation9], %s608_s28, %s608_s28, %s609_s29  }
  0x44   :  { %599 = dma.done.wait [#allocation3], 64  }
  0x45   :  { %600 = vsyncadd [#allocation3], 4294967232 }
  0x46   :  { %601 = dma.done.wait [#allocation6], 1152  }
  0x47   :  { %602 = vsyncadd [#allocation6], 4294966144 }
  0x48   :  { %603 = dma.done.wait [#allocation9], 1024  }
  0x49   :  { %604 = vsyncadd [#allocation9], 4294966272  ;;  %v613_v0 = vmov 0.0   ;;  %vm614_vm0 = vmmov 0   ;;  %v470_v1 = vld [vmem:[#allocation5] sm:$0xff]   ;;  %vm91_vm1 = vcmask 130048  }
  0x4a   :  { %415 = vmatprep.subr.bf16.mxu0 %v613_v0  ;;  %417 = vmatprep.mubr.msk.bf16.mxu0 %vm614_vm0, %v613_v0  ;;  %v75_v2 = vld [vmem:[#allocation2] sm:$0xf]  ;;  %v471_v3 = vld [vmem:[#allocation7] sm:$0xff]   ;;  %v472_v4 = vld [vmem:[#allocation7 + $0x8] sm:$0xff]   ;;  %s615_s19 = smov [#allocation10]  }
  0x4b   :  { %421 = vmatprep.subr.bf16.mxu1 %v613_v0  ;;  %437 = vmatprep.mubr.msk.bf16.mxu1 %vm614_vm0, %v613_v0  ;;  %v473_v5 = vld [vmem:[#allocation7 + $0x10] sm:$0xff]   ;;  %v474_v6 = vld [vmem:[#allocation7 + $0x18] sm:$0xff]   ;;  %v475_v7 = vld [vmem:[#allocation7 + $0x20] sm:$0xff]   ;;  %s363_s20 = sshll.u32 %s615_s19, 4  ;;  %s364_s20 = int_to_ptr.vmem [resolvable:$true] %s363_s20 }
  0x4c   :  { %416 = vmatpush3.bf16.msra.mxu0 %v470_v1  ;;  %422 = vmatpush3.bf16.msra.mxu1 %v471_v3  ;;  %v476_v8 = vld [vmem:[#allocation7 + $0x28] sm:$0xff]   ;;  %v477_v9 = vld [vmem:[#allocation7 + $0x30] sm:$0xff]   ;;  %v478_v10 = vld [vmem:[#allocation7 + $0x38] sm:$0xff]   ;;  %s577_s21 = scalar_lea.vmem %s364_s20, 128  ;;  %p582_p5 = scmp.lt.s32.totalorder %s364_s20, %s364_s20 }
  0x4d   :  { %441 = vmatprep.subr.bf16.mxu0 %v613_v0  ;;  %423 = vmatprep.subr.bf16.mxu1 %v613_v0  ;;  %v479_v11 = vld [vmem:[#allocation8] sm:$0xff]   ;;  %v480_v12 = vld [vmem:[#allocation8 + $0x8] sm:$0xff]   ;;  %v481_v13 = vld [vmem:[#allocation8 + $0x10] sm:$0xff]   ;;  %p578_p4 = scmp.ne.s32.totalorder %s364_s20, %s577_s21  ;;  %p583_p6 = scmp.lt.s32.totalorder %s577_s21, %s577_s21 }
  0x4e   :  { %v482_v14 = vld [vmem:[#allocation8 + $0x18] sm:$0xff]   ;;  %v483_v15 = vld [vmem:[#allocation8 + $0x20] sm:$0xff]   ;;  %v484_v16 = vld [vmem:[#allocation8 + $0x28] sm:$0xff]  }
  0x4f   :  { %418 = vmatmul.mubr.msk.bf16.vlgmr.msra.gmra.mrb[0].mxu0 %vm91_vm1, %v75_v2  ;;  %v374_v17 = vld [vmem:[%s748_s4] ss:$0 sm:$0xff]  ;;  %v485_v25 = vld [vmem:[#allocation8 + $0x30] sm:$0xff]   ;;  %v486_v26 = vld [vmem:[#allocation8 + $0x38] sm:$0xff]   ;;  %p584_p7 = por %p583_p6, %p582_p5 }
  0x50   :  { %457 = vmatprep.mubr.msk.bf16.mxu0 %vm614_vm0, %v613_v0  ;;  %424 = vmatpush3.bf16.msra.mxu1 %v472_v4  ;;  %v377_v27 = vld [vmem:[%s748_s4 + $0x1] ss:$0 sm:$0xff]  ;;  %v386_v35 = vld [vmem:[%s748_s4 + $0x2] ss:$0 sm:$0xff] }
  0x51   :  { %425 = vmatprep.subr.bf16.mxu1 %v613_v0  ;;  %442 = vmatpush3.bf16.msra.mxu0 %v479_v11  ;;  %p585_p8 = pnand %p584_p7, %p578_p4 }
  0x52   :  { %443 = vmatprep.subr.bf16.mxu0 %v613_v0 }
  0x54   :  { %426 = vmatpush3.bf16.msra.mxu1 %v473_v5 }
  0x55   :  { %427 = vmatprep.subr.bf16.mxu1 %v613_v0  ;;  %444 = vmatpush3.bf16.msra.mxu0 %v480_v12 }
  0x56   :  { %445 = vmatprep.subr.bf16.mxu0 %v613_v0 }
  0x58   :  { %428 = vmatpush3.bf16.msra.mxu1 %v474_v6 }
  0x59   :  { %429 = vmatprep.subr.bf16.mxu1 %v613_v0  ;;  %446 = vmatpush3.bf16.msra.mxu0 %v481_v13 }
  0x5a   :  { %447 = vmatprep.subr.bf16.mxu0 %v613_v0 }
  0x5c   :  { %430 = vmatpush3.bf16.msra.mxu1 %v475_v7 }
  0x5d   :  { %431 = vmatprep.subr.bf16.mxu1 %v613_v0  ;;  %448 = vmatpush3.bf16.msra.mxu0 %v482_v14 }
  0x5e   :  { %449 = vmatprep.subr.bf16.mxu0 %v613_v0 }
  0x60   :  { %432 = vmatpush3.bf16.msra.mxu1 %v476_v8 }
  0x61   :  { %433 = vmatprep.subr.bf16.mxu1 %v613_v0  ;;  %450 = vmatpush3.bf16.msra.mxu0 %v483_v15 }
  0x62   :  { %451 = vmatprep.subr.bf16.mxu0 %v613_v0 }
  0x64   :  { %434 = vmatpush3.bf16.msra.mxu1 %v477_v9 }
  0x65   :  { %435 = vmatprep.subr.bf16.mxu1 %v613_v0  ;;  %452 = vmatpush3.bf16.msra.mxu0 %v484_v16 }
  0x66   :  { %453 = vmatprep.subr.bf16.mxu0 %v613_v0 }
  0x68   :  { %436 = vmatpush3.bf16.msra.mxu1 %v478_v10 }
  0x69   :  { %454 = vmatpush3.bf16.msra.mxu0 %v485_v25 }
  0x6a   :  { %455 = vmatprep.subr.bf16.mxu0 %v613_v0 }
  0x6d   :  { %456 = vmatpush3.bf16.msra.mxu0 %v486_v26 }
 0x122   :  { %v129_v18 = vpop.f32.mrb[0].mxu0 }
 0x123   :  { %v130_v19 = vadd.f32 %v374_v17, %v129_v18  ;;  %v419_v20 = vpop.f32.mrb[1].mxu0 }
 0x124   :  { %v132_v21 = vpop.f32.mrb[2].mxu0 }
 0x125   :  { %v135_v22 = vmax.f32 %v130_v19, 0.0  ;;  %v420_v23 = vpop.f32.mrb[3].mxu0 }
 0x127   :  { %v136_v24 = vpack.c.bf16 %v135_v22, %v135_v22 }
 0x129   :  { %438 = vmatmul.mubr.bf16.vlgmr.msra.gmra.mrb[0].mxu1 %v136_v24 }
 0x1fc   :  { %v239_v28 = vpop.f32.mrb[0].mxu1 }
 0x1fd   :  { %v240_v29 = vadd.f32 %v377_v27, %v239_v28  ;;  %v439_v30 = vpop.f32.mrb[1].mxu1 }
 0x1fe   :  { %v242_v31 = vpop.f32.mrb[2].mxu1 }
 0x1ff   :  { %v245_v32 = vmax.f32 %v240_v29, 0.0  ;;  %v440_v33 = vpop.f32.mrb[3].mxu1 }
 0x201   :  { %v246_v34 = vpack.c.bf16 %v245_v32, %v245_v32 }
 0x203   :  { %458 = vmatmul.mubr.bf16.vlgmr.msra.gmra.mrb[4].mxu0 %v246_v34 }
 0x2d6   :  { %v349_v36 = vpop.f32.mrb[4].mxu0 }
 0x2d7   :  { %v350_v37 = vadd.f32 %v386_v35, %v349_v36  ;;  %v459_v38 = vpop.f32.mrb[5].mxu0 }
 0x2d8   :  { %v352_v39 = vpop.f32.mrb[6].mxu0 }
 0x2d9   :  { %487 = vtanh.f32 %v350_v37  ;;  %v460_v40 = vpop.f32.mrb[7].mxu0 }
 0x2e3   :  { %v488_v41 = vpop.eup %487 }
 0x2e4   :  { %356 = vst [vmem:[#allocation10] sm:$0xff] %v488_v41 }
 0x2e5   :  { %588 = shalt.err (!%p585_p8)
}
 0x2e6   :  { %s589_s23 = scalar_lea.hbm %s749_s5, 128 }
 0x2e7   :  { %p590_p9 = scmp.ne.s32.totalorder %s749_s5, %s589_s23  ;;  %p593_p10 = scmp.lt.u32.totalorder %s589_s23, %s749_s5 }
 0x2e9   :  { %p595_p11 = pnand %p593_p10, %p590_p9 }
 0x2eb   :  { %598 = shalt.err (!%p595_p11)
}
 0x2ec   :  { %366 = dma.vmem_to_hbm [thread:$0]  %s364_s20, 128, %s749_s5, [#allocation4]  }
 0x2ed   :  { %605 = dma.done.wait [#allocation4], 128  }
 0x2ee   :  { %606 = vsyncadd [#allocation4], 4294967168 }
 0x2ef   :  { %370 = vsyncpa [#allocation3], 1 }
 0x2f0   :  { %371 = vsyncpa [#allocation6], 1 }
 0x2f1   :  { %372 = vsyncpa [#allocation9], 1 }
 0x2f2   :  { %373 = vsyncpa [#allocation4], 1 }

</bundles_post_ra>
